<compile_context>
chip_gen: v5e
topology: v5e:2x2
jax: 0.10.0
libtpu: 0.0.40
codegen_flags: <defaults>
</compile_context>

<pallas_src>
import jax
import jax.numpy as jnp
from jax.experimental import pallas as pl
from jax.experimental.pallas import tpu as pltpu

_PACK = 8            # batch rows packed per lane-row (sublane count)
_SUB_ROWS = 128      # packed rows per in-kernel compute chunk (vreg bound)
_MAX_ROW_TILE = 2048 # packed rows per grid step (= 16384 batch rows)


def _round_up(a, m):
    return ((a + m - 1) // m) * m


# ----------------------------------------------------------------------------
# Packed (lane-dense) path: B % 8 == 0, small layer dims.
# ----------------------------------------------------------------------------
def _make_packed_kernel(sub_rows: int):
    def kernel(xp_ref, w1p_ref, b1p_ref, w2p_ref, b2p_ref, op_ref):
        # Weights/biases are VMEM-resident (constant index_maps); load once.
        w1p = w1p_ref[...]
        b1p = b1p_ref[...]
        w2p = w2p_ref[...]
        b2p = b2p_ref[...]
        num_sub = xp_ref.shape[0] // sub_rows  # static; row_tile % sub_rows == 0

        # Sub-chunk loop bounds live ranges of the f32 intermediate so large
        # DMA tiles do not trade pipeline savings for vreg spill traffic.
        @pl.loop(0, num_sub)
        def _(s):
            r0 = pl.multiple_of(s * sub_rows, sub_rows)
            xc = xp_ref[pl.ds(r0, sub_rows), :].astype(w1p.dtype)
            h = jnp.dot(xc, w1p, preferred_element_type=jnp.float32)
            h = jnp.maximum(h + b1p, 0.0)                 # bias + ReLU in f32
            h = h.astype(w2p.dtype)
            out = jnp.dot(h, w2p, preferred_element_type=jnp.float32)
            op_ref[pl.ds(r0, sub_rows), :] = (out + b2p).astype(op_ref.dtype)

    return kernel


def _feedforward_packed(x, w1, b1, w2, b2):
    B, D_in = x.shape
    H = w1.shape[1]
    D_out = w2.shape[1]
    P = _PACK
    rows = B // P

    # Free, contiguous row-major reshape: 8 batch rows -> one lane-dense row.
    xp = x.reshape(rows, P * D_in)

    # Block-diagonal weight expansion (tiny, built once per call by XLA):
    # (xp @ kron(I_P, W1)) row r holds [h[Pr], h[Pr+1], ..., h[Pr+P-1]].
    eye = jnp.eye(P, dtype=w1.dtype)
    w1p = jnp.kron(eye, w1)                       # (P*D_in, P*H)
    w2p = jnp.kron(jnp.eye(P, dtype=w2.dtype), w2)  # (P*H, P*D_out)
    b1p = jnp.tile(b1, P).reshape(1, P * H)
    b2p = jnp.tile(b2, P).reshape(1, P * D_out)

    # Tile selection: exact single block for small inputs (no masking at all);
    # otherwise big multiples of _SUB_ROWS, capped, and split so that >=2 grid
    # blocks exist (v7x megacore gets both TensorCores busy).
    if rows <= _SUB_ROWS:
        row_tile = rows
    else:
        row_tile = min(_MAX_ROW_TILE, _round_up(pl.cdiv(rows, 2), _SUB_ROWS))
    sub = min(_SUB_ROWS, row_tile)
    grid = (pl.cdiv(rows, row_tile),)

    itemsize = jnp.dtype(x.dtype).itemsize
    flops = 2 * rows * ((P * D_in) * (P * H) + (P * H) * (P * D_out))
    bytes_accessed = (x.size + B * D_out) * itemsize + (
        w1p.size + w2p.size + b1p.size + b2p.size) * jnp.dtype(w1.dtype).itemsize

    out_p = pl.pallas_call(
        _make_packed_kernel(sub),
        out_shape=jax.ShapeDtypeStruct((rows, P * D_out), x.dtype),
        grid=grid,
        in_specs=[
            pl.BlockSpec((row_tile, P * D_in), lambda i: (i, 0)),  # streamed x
            pl.BlockSpec((P * D_in, P * H), lambda i: (0, 0)),     # resident
            pl.BlockSpec((1, P * H), lambda i: (0, 0)),            # resident
            pl.BlockSpec((P * H, P * D_out), lambda i: (0, 0)),    # resident
            pl.BlockSpec((1, P * D_out), lambda i: (0, 0)),        # resident
        ],
        out_specs=pl.BlockSpec((row_tile, P * D_out), lambda i: (i, 0)),
        compiler_params=pltpu.CompilerParams(
            dimension_semantics=("parallel",),        # megacore on v7x
            vmem_limit_bytes=32 * 1024 * 1024,        # ~3.5 MiB actually used
        ),
        cost_estimate=pl.CostEstimate(
            flops=flops, transcendentals=0, bytes_accessed=bytes_accessed),
    )(xp, w1p, b1p, w2p, b2p)

    # Free, contiguous reshape back to the module's (B, D_out) layout.
    return out_p.reshape(B, D_out)


# ----------------------------------------------------------------------------
# Row-major fallback (any B): same math, un-packed layout.
# ----------------------------------------------------------------------------
def _mlp_kernel(x_ref, w1_ref, b1_ref, w2_ref, b2_ref, o_ref):
    x = x_ref[...].astype(w1_ref.dtype)
    h = jnp.dot(x, w1_ref[...], preferred_element_type=jnp.float32)
    h = jnp.maximum(h + b1_ref[...], 0.0)
    h = h.astype(w2_ref.dtype)
    out = jnp.dot(h, w2_ref[...], preferred_element_type=jnp.float32)
    o_ref[...] = (out + b2_ref[...]).astype(o_ref.dtype)


def _feedforward_rowmajor(x, w1, b1, w2, b2):
    B, D_in = x.shape
    H = w1.shape[1]
    D_out = w2.shape[1]
    b1_2d = b1.reshape(1, H)
    b2_2d = b2.reshape(1, D_out)

    # Small B: single exact block (block dims == array dims, no masking).
    # Large B: 1024-row tiles; Pallas masks the partial last block (no pad).
    bt = B if B <= 1024 else 1024
    grid = (pl.cdiv(B, bt),)

    itemsize = jnp.dtype(x.dtype).itemsize
    flops = 2 * B * (D_in * H + H * D_out)
    bytes_accessed = (x.size + B * D_out) * itemsize + (
        w1.size + w2.size + b1.size + b2.size) * jnp.dtype(w1.dtype).itemsize

    return pl.pallas_call(
        _mlp_kernel,
        out_shape=jax.ShapeDtypeStruct((B, D_out), x.dtype),
        grid=grid,
        in_specs=[
            pl.BlockSpec((bt, D_in), lambda i: (i, 0)),   # streamed activations
            pl.BlockSpec((D_in, H), lambda i: (0, 0)),    # resident weights
            pl.BlockSpec((1, H), lambda i: (0, 0)),
            pl.BlockSpec((H, D_out), lambda i: (0, 0)),
            pl.BlockSpec((1, D_out), lambda i: (0, 0)),
        ],
        out_specs=pl.BlockSpec((bt, D_out), lambda i: (i, 0)),
        compiler_params=pltpu.CompilerParams(
            dimension_semantics=("parallel",),
            vmem_limit_bytes=32 * 1024 * 1024,
        ),
        cost_estimate=pl.CostEstimate(
            flops=flops, transcendentals=0, bytes_accessed=bytes_accessed),
    )(x, w1, b1_2d, w2, b2_2d)


def feedforward_nn(x, w1, b1, w2, b2):
    """FeedforwardNN forward: relu(x @ w1 + b1) @ w2 + b2.

    x: (B, D_in); w1: (D_in, H); b1: (H,); w2: (H, D_out); b2: (D_out,).
    """
    B, D_in = x.shape
    H = w1.shape[1]
    D_out = w2.shape[1]
    if B % _PACK == 0 and max(D_in, H, D_out) <= 128:
        return _feedforward_packed(x, w1, b1, w2, b2)
    return _feedforward_rowmajor(x, w1, b1, w2, b2)


if __name__ == "__main__":
    # Shapes consistent with the module: input_dim=16, hidden_dim=32, output_dim=8.
    input_dim, hidden_dim, output_dim = 16, 32, 8

    key = jax.random.PRNGKey(0)
    kw1, kb1, kw2, kb2, kx1, kx2, kx3, kx4 = jax.random.split(key, 8)

    w1 = jax.random.normal(kw1, (input_dim, hidden_dim), dtype=jnp.float32) * 0.1
    b1 = jax.random.normal(kb1, (hidden_dim,), dtype=jnp.float32) * 0.1
    w2 = jax.random.normal(kw2, (hidden_dim, output_dim), dtype=jnp.float32) * 0.1
    b2 = jax.random.normal(kb2, (output_dim,), dtype=jnp.float32) * 0.1

    def ref_fn(xv):
        return jnp.maximum(xv @ w1 + b1, 0.0) @ w2 + b2

    # (B=8)   packed path, single tiny block
    # (B=1000) packed path, partial (masked) block
    # (B=4096) packed path, grid=2 blocks + in-kernel sub-chunk loop
    # (B=37)  fallback row-major path (B not divisible by 8)
    cases = [(8, kx1), (1000, kx2), (4096, kx3), (37, kx4)]
    for B, k in cases:
        xv = jax.random.normal(k, (B, input_dim), dtype=jnp.float32)
        out = jax.block_until_ready(feedforward_nn(xv, w1, b1, w2, b2))
        assert out.shape == (B, output_dim), f"bad shape at B={B}: {out.shape}"
        ref = ref_fn(xv)
        assert jnp.allclose(out, ref, atol=1e-5, rtol=1e-5), f"mismatch at B={B}"

    print("KERNEL_OK")
</pallas_src>

<mosaic_0001>
module attributes {stable_mosaic.version = 11 : i64} {
  func.func @kernel(%arg0: i32, %arg1: memref<1x128xf32, #tpu.memory_space<vmem>>, %arg2: memref<128x256xf32, #tpu.memory_space<vmem>>, %arg3: memref<1x256xf32, #tpu.memory_space<vmem>>, %arg4: memref<256x64xf32, #tpu.memory_space<vmem>>, %arg5: memref<1x64xf32, #tpu.memory_space<vmem>>, %arg6: memref<1x64xf32, #tpu.memory_space<vmem>>) attributes {dimension_semantics = [#tpu.dimension_semantics<parallel>], iteration_bounds = array<i64: 1>, scalar_prefetch = 0 : i64, scratch_operands = 0 : i64, tpu.core_type = #tpu.core_type<tc>, window_params = [{transform_indices = @transform_0, window_bounds = array<i64: 1, 128>}, {pipeline_mode = #tpu.pipeline_mode<synchronous>, transform_indices = @transform_1, window_bounds = array<i64: 128, 256>}, {pipeline_mode = #tpu.pipeline_mode<synchronous>, transform_indices = @transform_2, window_bounds = array<i64: 1, 256>}, {pipeline_mode = #tpu.pipeline_mode<synchronous>, transform_indices = @transform_3, window_bounds = array<i64: 256, 64>}, {pipeline_mode = #tpu.pipeline_mode<synchronous>, transform_indices = @transform_4, window_bounds = array<i64: 1, 64>}, {transform_indices = @transform_5, window_bounds = array<i64: 1, 64>}]} {
    %c0 = arith.constant 0 : index
    %c0_0 = arith.constant 0 : index
    %0 = vector.load %arg2[%c0, %c0_0] : memref<128x256xf32, #tpu.memory_space<vmem>>, vector<128x256xf32>
    %c0_1 = arith.constant 0 : index
    %c0_2 = arith.constant 0 : index
    %1 = vector.load %arg3[%c0_1, %c0_2] : memref<1x256xf32, #tpu.memory_space<vmem>>, vector<1x256xf32>
    %c0_3 = arith.constant 0 : index
    %c0_4 = arith.constant 0 : index
    %2 = vector.load %arg4[%c0_3, %c0_4] : memref<256x64xf32, #tpu.memory_space<vmem>>, vector<256x64xf32>
    %c0_5 = arith.constant 0 : index
    %c0_6 = arith.constant 0 : index
    %3 = vector.load %arg5[%c0_5, %c0_6] : memref<1x64xf32, #tpu.memory_space<vmem>>, vector<1x64xf32>
    %c0_i32 = arith.constant 0 : i32
    %c1_i32 = arith.constant 1 : i32
    %4 = arith.muli %c0_i32, %c1_i32 : i32
    %c0_i32_7 = arith.constant 0 : i32
    %5 = arith.addi %c0_i32_7, %4 : i32
    %c1_i32_8 = arith.constant 1 : i32
    %6 = arith.muli %5, %c1_i32_8 : i32
    %7 = tpu.assume_multiple %6, 1 : i32
    %8 = arith.index_cast %7 : i32 to index
    %c0_9 = arith.constant 0 : index
    %9 = vector.load %arg1[%8, %c0_9] : memref<1x128xf32, #tpu.memory_space<vmem>>, vector<1x128xf32>
    %cst = arith.constant dense<0.000000e+00> : vector<1x256xf32>
    %10 = tpu.matmul %9, %0, %cst {dimension_numbers = #tpu.dot_dimension_numbers<[1], [0], [0], [1], [0, 0, 1, 1], [], []>} : vector<1x128xf32>, vector<128x256xf32>, vector<1x256xf32> -> vector<1x256xf32>
    %11 = arith.addf %10, %1 : vector<1x256xf32>
    %cst_10 = arith.constant 0.000000e+00 : f32
    %12 = vector.broadcast %cst_10 : f32 to vector<1x256xf32>
    %13 = arith.maximumf %11, %12 : vector<1x256xf32>
    %cst_11 = arith.constant dense<0.000000e+00> : vector<1x64xf32>
    %14 = tpu.matmul %13, %2, %cst_11 {dimension_numbers = #tpu.dot_dimension_numbers<[1], [0], [0], [1], [0, 0, 1, 1], [], []>} : vector<1x256xf32>, vector<256x64xf32>, vector<1x64xf32> -> vector<1x64xf32>
    %15 = arith.addf %14, %3 : vector<1x64xf32>
    %16 = arith.index_cast %7 : i32 to index
    %c0_12 = arith.constant 0 : index
    %17 = vector.load %arg6[%16, %c0_12] : memref<1x64xf32, #tpu.memory_space<vmem>>, vector<1x64xf32>
    tpu.vector_store %arg6[%16, %c0_12], %15 {strides = array<i32>} : memref<1x64xf32, #tpu.memory_space<vmem>>, vector<1x64xf32>,
    %c1_i32_13 = arith.constant 1 : i32
    return
  }
  func.func @transform_0(%arg0: i32) -> (i32, i32) {
    %c0_i32 = arith.constant 0 : i32
    %c0_i32_0 = arith.constant 0 : i32
    return %arg0, %c0_i32 : i32, i32
  }
  func.func @transform_1(%arg0: i32) -> (i32, i32) {
    %c0_i32 = arith.constant 0 : i32
    %c0_i32_0 = arith.constant 0 : i32
    %c0_i32_1 = arith.constant 0 : i32
    return %c0_i32, %c0_i32_0 : i32, i32
  }
  func.func @transform_2(%arg0: i32) -> (i32, i32) {
    %c0_i32 = arith.constant 0 : i32
    %c0_i32_0 = arith.constant 0 : i32
    %c0_i32_1 = arith.constant 0 : i32
    return %c0_i32, %c0_i32_0 : i32, i32
  }
  func.func @transform_3(%arg0: i32) -> (i32, i32) {
    %c0_i32 = arith.constant 0 : i32
    %c0_i32_0 = arith.constant 0 : i32
    %c0_i32_1 = arith.constant 0 : i32
    return %c0_i32, %c0_i32_0 : i32, i32
  }
  func.func @transform_4(%arg0: i32) -> (i32, i32) {
    %c0_i32 = arith.constant 0 : i32
    %c0_i32_0 = arith.constant 0 : i32
    %c0_i32_1 = arith.constant 0 : i32
    return %c0_i32, %c0_i32_0 : i32, i32
  }
  func.func @transform_5(%arg0: i32) -> (i32, i32) {
    %c0_i32 = arith.constant 0 : i32
    %c0_i32_0 = arith.constant 0 : i32
    return %arg0, %c0_i32 : i32, i32
  }
}

</mosaic_0001>

<bundles_post_ra>
// kernel: tpu_custom_call.1
= control target key start
LH: loop header
LB: loop body
LE: loop exit
PB: predicated region body
PF: predicated region fallthrough
CT: control target
= control target key end

     0   :  { %s455_s0 = inlined_call_operand.vmem [shape: f32[1,128], index: 0, kind: input, shape index: {}]   ;;  %s456_s1 = inlined_call_operand.vmem [shape: f32[128,256], index: 1, kind: input, shape index: {}]   ;;  %s457_s2 = inlined_call_operand.vmem [shape: f32[1,256], index: 2, kind: input, shape index: {}]   ;;  %s458_s3 = inlined_call_operand.vmem [shape: f32[256,64], index: 3, kind: input, shape index: {}]   ;;  %s459_s4 = inlined_call_operand.vmem [shape: f32[1,64], index: 4, kind: input, shape index: {}]   ;;  %s460_s5 = inlined_call_operand.hbm [shape: f32[1,64], index: 5, kind: output, shape index: {}]  }
   0x1   :  { %v51_v0 = vld [vmem:[%s456_s1 + $0xf0] sm:$0xff]  ;;  %v49_v1 = vld [vmem:[%s456_s1 + $0xe0] sm:$0xff]  ;;  %v52_v2 = vld [vmem:[%s456_s1 + $0xf8] sm:$0xff] }
   0x2   :  { %93 = vmatpush.msra.mxu0 %v51_v0  ;;  %113 = vmatpush.msra.mxu1 %v52_v2  ;;  %v50_v3 = vld [vmem:[%s456_s1 + $0xe8] sm:$0xff]  ;;  %v47_v4 = vld [vmem:[%s456_s1 + $0xd0] sm:$0xff]  ;;  %v48_v5 = vld [vmem:[%s456_s1 + $0xd8] sm:$0xff] }
   0x3   :  { %v45_v6 = vld [vmem:[%s456_s1 + $0xc0] sm:$0xff]  ;;  %v46_v7 = vld [vmem:[%s456_s1 + $0xc8] sm:$0xff]  ;;  %v43_v8 = vld [vmem:[%s456_s1 + $0xb0] sm:$0xff] }
   0x4   :  { %94 = vmatpush.msra.mxu0 %v49_v1  ;;  %114 = vmatpush.msra.mxu1 %v50_v3  ;;  %v44_v9 = vld [vmem:[%s456_s1 + $0xb8] sm:$0xff]  ;;  %v41_v10 = vld [vmem:[%s456_s1 + $0xa0] sm:$0xff]  ;;  %v42_v11 = vld [vmem:[%s456_s1 + $0xa8] sm:$0xff] }
   0x5   :  { %v39_v12 = vld [vmem:[%s456_s1 + $0x90] sm:$0xff]  ;;  %v40_v13 = vld [vmem:[%s456_s1 + $0x98] sm:$0xff]  ;;  %v37_v17 = vld [vmem:[%s456_s1 + $0x80] sm:$0xff] }
   0x6   :  { %95 = vmatpush.msra.mxu0 %v47_v4  ;;  %115 = vmatpush.msra.mxu1 %v48_v5  ;;  %v69_v14 = vld [vmem:[%s458_s3 + $0x78] sm:$0xff]  ;;  %v68_v15 = vld [vmem:[%s458_s3 + $0x70] sm:$0xff]  ;;  %v38_v18 = vld [vmem:[%s456_s1 + $0x88] sm:$0xff] }
   0x7   :  { %v85_v16 = vld [vmem:[%s458_s3 + $0xf8] sm:$0xff]  ;;  %135 = vmatpush.msra.mxu2 %v69_v14  ;;  %v84_v19 = vld [vmem:[%s458_s3 + $0xf0] sm:$0xff]  ;;  %v67_v20 = vld [vmem:[%s458_s3 + $0x68] sm:$0xff] }
   0x8   :  { %96 = vmatpush.msra.mxu0 %v45_v6  ;;  %116 = vmatpush.msra.mxu1 %v46_v7  ;;  %v83_v21 = vld [vmem:[%s458_s3 + $0xe8] sm:$0xff]  ;;  %v35_v22 = vld [vmem:[%s456_s1 + $0x70] sm:$0xff]  ;;  %v36_v23 = vld [vmem:[%s456_s1 + $0x78] sm:$0xff] }
   0x9   :  { %155 = vmatpush.msra.mxu3 %v85_v16  ;;  %136 = vmatpush.msra.mxu2 %v68_v15  ;;  %v66_v24 = vld [vmem:[%s458_s3 + $0x60] sm:$0xff]  ;;  %v34_v27 = vld [vmem:[%s456_s1 + $0x68] sm:$0xff]  ;;  %v65_v28 = vld [vmem:[%s458_s3 + $0x58] sm:$0xff] }
   0xa   :  { %97 = vmatpush.msra.mxu0 %v43_v8  ;;  %117 = vmatpush.msra.mxu1 %v44_v9  ;;  %v82_v25 = vld [vmem:[%s458_s3 + $0xe0] sm:$0xff]  ;;  %v81_v29 = vld [vmem:[%s458_s3 + $0xd8] sm:$0xff]  ;;  %v31_v30 = vld [vmem:[%s456_s1 + $0x50] sm:$0xff] }
   0xb   :  { %156 = vmatpush.msra.mxu3 %v84_v19  ;;  %v33_v26 = vld [vmem:[%s456_s1 + $0x60] sm:$0xff]  ;;  %137 = vmatpush.msra.mxu2 %v67_v20  ;;  %v32_v31 = vld [vmem:[%s456_s1 + $0x58] sm:$0xff]  ;;  %v64_v32 = vld [vmem:[%s458_s3 + $0x50] sm:$0xff] }
   0xc   :  { %98 = vmatpush.msra.mxu0 %v41_v10  ;;  %118 = vmatpush.msra.mxu1 %v42_v11  ;;  %v80_v33 = vld [vmem:[%s458_s3 + $0xd0] sm:$0xff] }
   0xd   :  { %157 = vmatpush.msra.mxu3 %v83_v21  ;;  %138 = vmatpush.msra.mxu2 %v66_v24 }
   0xe   :  { %99 = vmatpush.msra.mxu0 %v39_v12  ;;  %119 = vmatpush.msra.mxu1 %v40_v13 }
   0xf   :  { %158 = vmatpush.msra.mxu3 %v82_v25 }
  0x10   :  { %100 = vmatpush.msra.mxu0 %v37_v17  ;;  %120 = vmatpush.msra.mxu1 %v38_v18 }
  0x12   :  { %101 = vmatpush.msra.mxu0 %v35_v22  ;;  %121 = vmatpush.msra.mxu1 %v36_v23 }
  0x14   :  { %102 = vmatpush.msra.mxu0 %v33_v26  ;;  %122 = vmatpush.msra.mxu1 %v34_v27 }
  0x15   :  { %10 = vsyncpa [#allocation3], 0  ;;  %v29_v34 = vld [vmem:[%s456_s1 + $0x40] sm:$0xff]  ;;  %v30_v35 = vld [vmem:[%s456_s1 + $0x48] sm:$0xff]  ;;  %139 = vmatpush.msra.mxu2 %v65_v28  ;;  %159 = vmatpush.msra.mxu3 %v81_v29  ;;  %s184_s27 = sshll.u32 %s460_s5, 4  ;;  %vm175_vm0 = vcmask 516096   ;;  %s185_s27 = int_to_ptr.hbm [resolvable:$true] %s184_s27 }
  0x16   :  { %103 = vmatpush.msra.mxu0 %v31_v30  ;;  %123 = vmatpush.msra.mxu1 %v32_v31  ;;  %v63_v36 = vld [vmem:[%s458_s3 + $0x48] sm:$0xff]  ;;  %v27_v38 = vld [vmem:[%s456_s1 + $0x30] sm:$0xff]  ;;  %v28_v39 = vld [vmem:[%s456_s1 + $0x38] sm:$0xff] }
  0x17   :  { %v79_v37 = vld [vmem:[%s458_s3 + $0xc8] sm:$0xff]  ;;  %140 = vmatpush.msra.mxu2 %v64_v32  ;;  %160 = vmatpush.msra.mxu3 %v80_v33  ;;  %v62_v40 = vld [vmem:[%s458_s3 + $0x40] sm:$0xff]  ;;  %v61_v44 = vld [vmem:[%s458_s3 + $0x38] sm:$0xff] }
  0x18   :  { %104 = vmatpush.msra.mxu0 %v29_v34  ;;  %124 = vmatpush.msra.mxu1 %v30_v35  ;;  %v78_v41 = vld [vmem:[%s458_s3 + $0xc0] sm:$0xff]  ;;  %v26_v43 = vld [vmem:[%s456_s1 + $0x28] sm:$0xff]  ;;  %v77_v45 = vld [vmem:[%s458_s3 + $0xb8] sm:$0xff] }
  0x19   :  { %v25_v42 = vld [vmem:[%s456_s1 + $0x20] sm:$0xff]  ;;  %141 = vmatpush.msra.mxu2 %v63_v36  ;;  %161 = vmatpush.msra.mxu3 %v79_v37  ;;  %v23_v46 = vld [vmem:[%s456_s1 + $0x10] sm:$0xff]  ;;  %v24_v47 = vld [vmem:[%s456_s1 + $0x18] sm:$0xff] }
  0x1a   :  { %105 = vmatpush.msra.mxu0 %v27_v38  ;;  %125 = vmatpush.msra.mxu1 %v28_v39  ;;  %v60_v48 = vld [vmem:[%s458_s3 + $0x30] sm:$0xff]  ;;  %v21_v50 = vld [vmem:[%s456_s1] sm:$0xff]  ;;  %v22_v51 = vld [vmem:[%s456_s1 + $0x8] sm:$0xff] }
  0x1b   :  { %142 = vmatpush.msra.mxu2 %v62_v40  ;;  %162 = vmatpush.msra.mxu3 %v78_v41  ;;  %v76_v49 = vld [vmem:[%s458_s3 + $0xb0] sm:$0xff]  ;;  %v87_v52 = vld [vmem:[%s455_s0] sm:$0x1]  ;;  %v59_v53 = vld [vmem:[%s458_s3 + $0x28] sm:$0xff] }
  0x1c   :  { %106 = vmatpush.msra.mxu0 %v25_v42  ;;  %126 = vmatpush.msra.mxu1 %v26_v43  ;;  %v75_v54 = vld [vmem:[%s458_s3 + $0xa8] sm:$0xff]  ;;  %v58_v55 = vld [vmem:[%s458_s3 + $0x20] sm:$0xff]  ;;  %v57_v57 = vld [vmem:[%s458_s3 + $0x18] sm:$0xff] }
  0x1d   :  { %143 = vmatpush.msra.mxu2 %v61_v44  ;;  %163 = vmatpush.msra.mxu3 %v77_v45  ;;  %v74_v56 = vld [vmem:[%s458_s3 + $0xa0] sm:$0xff]  ;;  %v56_v58 = vld [vmem:[%s458_s3 + $0x10] sm:$0xff]  ;;  %v73_v59 = vld [vmem:[%s458_s3 + $0x98] sm:$0xff] }
  0x1e   :  { %107 = vmatpush.msra.mxu0 %v23_v46  ;;  %127 = vmatpush.msra.mxu1 %v24_v47  ;;  %v55_v60 = vld [vmem:[%s458_s3 + $0x8] sm:$0xff]  ;;  %v72_v61 = vld [vmem:[%s458_s3 + $0x90] sm:$0xff]  ;;  %v54_v62 = vld [vmem:[%s458_s3] sm:$0xff] }
  0x1f   :  { %144 = vmatpush.msra.mxu2 %v60_v48  ;;  %164 = vmatpush.msra.mxu3 %v76_v49  ;;  %v71_v63 = vld [vmem:[%s458_s3 + $0x88] sm:$0xff]  ;;  %v70_v0 = vld [vmem:[%s458_s3 + $0x80] sm:$0xff]  ;;  %s220_s3 = smov [#allocation2]  }
  0x20   :  { %108 = vmatpush.msra.mxu0 %v21_v50  ;;  %128 = vmatpush.msra.mxu1 %v22_v51  ;;  %v53_v1 = vld [vmem:[%s457_s2] sm:$0x3]  ;;  %s182_s25 = sshll.u32 %s220_s3, 4  ;;  %s183_s25 = int_to_ptr.vmem [resolvable:$true] %s182_s25 }
  0x21   :  { %109 = vmatmul.f32.vlgmr.msra.gmra.mxu0 %v87_v52  ;;  %129 = vmatmul.f32.vlgmr.msra.gmra.mxu1 %v87_v52  ;;  %v89_v2 = vperm.slane %v53_v1, 0  ;;  %v90_v3 = vperm.slane %v53_v1, 1  ;;  %v86_v10 = vld [vmem:[%s459_s4] sm:$0x1] }
  0x22   :  { %145 = vmatpush.msra.mxu2 %v59_v53  ;;  %165 = vmatpush.msra.mxu3 %v75_v54 }
  0x24   :  { %146 = vmatpush.msra.mxu2 %v58_v55  ;;  %166 = vmatpush.msra.mxu3 %v74_v56 }
  0x26   :  { %147 = vmatpush.msra.mxu2 %v57_v57  ;;  %167 = vmatpush.msra.mxu3 %v73_v59 }
  0x28   :  { %148 = vmatpush.msra.mxu2 %v56_v58  ;;  %168 = vmatpush.msra.mxu3 %v72_v61 }
  0x2a   :  { %149 = vmatpush.msra.mxu2 %v55_v60  ;;  %169 = vmatpush.msra.mxu3 %v71_v63 }
  0x2c   :  { %150 = vmatpush.msra.mxu2 %v54_v62  ;;  %170 = vmatpush.msra.mxu3 %v70_v0 }
  0x9e   :  { %v110_v4 = vpop.f32.mrf.mxu0  ;;  %v130_v5 = vpop.f32.mrf.mxu1 }
  0x9f   :  { %v111_v6 = vadd.f32 %v110_v4, %v89_v2  ;;  %v131_v7 = vadd.f32 %v130_v5, %v90_v3 }
  0xa1   :  { %v133_v8 = vmax.f32 %v111_v6, 0.0  ;;  %v134_v9 = vmax.f32 %v131_v7, 0.0 }
  0xa3   :  { %151 = vmatmul.f32.vlgmr.msra.gmra.mxu2 %v133_v8  ;;  %171 = vmatmul.f32.vlgmr.msra.gmra.mxu3 %v134_v9 }
 0x126   :  { %v152_v11 = vpop.f32.mrf.mxu2  ;;  %v172_v12 = vpop.f32.mrf.mxu3 }
 0x127   :  { %v153_v13 = vadd.f32 %v152_v11, %v86_v10 }
 0x129   :  { %v173_v14 = vadd.f32 %v172_v12, %v153_v13 }
 0x12b   :  { %176 = vst.msk [vmem:[#allocation2] sm:$0x1] %vm175_vm0, %v173_v14 }
 0x12c   :  { %187 = dma.vmem_to_hbm [thread:$0]  %s183_s25, 16, %s185_s27, [#allocation3]  }
 0x12d   :  { %218 = dma.done.wait [#allocation3], 16  }
 0x12e   :  { %219 = vsyncadd [#allocation3], 4294967280 }
 0x12f   :  { %192 = vsyncpa [#allocation3], 1 }

</bundles_post_ra>
